<compile_context>
chip_gen: v7x
topology: tpu7x:2x2x1
jax: 0.10.0
libtpu: 0.0.40
codegen_flags: <defaults>
</compile_context>

<pallas_src>
import jax
import jax.numpy as jnp
from jax.experimental import pallas as pl
from jax.experimental.pallas import tpu as pltpu

_SUBLANE_FOLD = 8  # rows-per-sample after the sublane-packing reshape


def _dice_kernel(x_ref, t_ref, inter_ref, denom_ref):
    """Accumulates per-row partial sums across the lane-tile (k) grid axis.

    Grid = (row_blocks [parallel], lane_tiles [arbitrary/reduction]).
    Outputs are resident accumulators across the k axis.
    """
    k = pl.program_id(1)

    @pl.when(k == 0)
    def _():
        inter_ref[...] = jnp.zeros_like(inter_ref)
        denom_ref[...] = jnp.zeros_like(denom_ref)

    x = x_ref[...].astype(jnp.float32)
    t = t_ref[...].astype(jnp.float32)

    inter_ref[...] += jnp.sum(x * t, axis=1, keepdims=True)
    denom_ref[...] += jnp.sum(x + t, axis=1, keepdims=True)  # fused x.sum + t.sum


def _pick_tile_d(d2_128, max_tile_d):
    """Largest multiple-of-128 divisor of d2_128 that is <= max_tile_d.

    If only small divisors exist and the row is long, fall back to max_tile_d
    and accept a little zero padding instead of tiny tiles.
    """
    best = 128
    cand = 128
    limit = min(d2_128, max_tile_d)
    while cand <= limit:
        if d2_128 % cand == 0:
            best = cand
        cand += 128
    if best < 1024 and d2_128 > max_tile_d:
        best = max_tile_d
    return best


def dice_loss(inp, target, *, max_tile_d=16384):
    """inp, target: (N, C, H, W). Returns scalar f32 loss (same as DiceLoss)."""
    N = target.shape[0]
    R = _SUBLANE_FOLD

    x = inp.reshape(N, -1)
    t = target.reshape(N, -1)
    D = x.shape[1]

    # --- lane-dimension sizing (after folding each sample into R sublane rows)
    d2 = -(-D // R)                      # ceil(D / R)
    d2_128 = -(-d2 // 128) * 128         # round up to a lane multiple
    tile_d = _pick_tile_d(d2_128, max_tile_d)
    d2_pad = -(-d2_128 // tile_d) * tile_d
    d_pad = R * d2_pad

    if d_pad != D:
        pad = d_pad - D
        x = jnp.pad(x, ((0, 0), (0, pad)))   # zeros contribute nothing to sums
        t = jnp.pad(t, ((0, 0), (0, pad)))

    rows = N * R
    x = x.reshape(rows, d2_pad)
    t = t.reshape(rows, d2_pad)

    # One full-sublane row block per sample -> N-way "parallel" axis (megacore
    # on v7x); reduction over lane tiles is the trailing "arbitrary" axis.
    row_block = 8
    grid = (rows // row_block, d2_pad // tile_d)

    inter_rows, denom_rows = pl.pallas_call(
        _dice_kernel,
        out_shape=(jax.ShapeDtypeStruct((rows, 1), jnp.float32),
                   jax.ShapeDtypeStruct((rows, 1), jnp.float32)),
        grid_spec=pltpu.PrefetchScalarGridSpec(
            num_scalar_prefetch=0,
            grid=grid,
            in_specs=[
                pl.BlockSpec((row_block, tile_d), lambda i, k: (i, k)),
                pl.BlockSpec((row_block, tile_d), lambda i, k: (i, k)),
            ],
            out_specs=(
                pl.BlockSpec((row_block, 1), lambda i, k: (i, 0)),
                pl.BlockSpec((row_block, 1), lambda i, k: (i, 0)),
            ),
        ),
        compiler_params=pltpu.CompilerParams(
            dimension_semantics=("parallel", "arbitrary")),
    )(x, t)

    # Fold the R sublane rows of each sample back together, then finish the
    # dice formula (dividing by the TRUE batch size N, not N*R).
    inter_s = inter_rows.reshape(N, R).sum(axis=1)
    denom_s = denom_rows.reshape(N, R).sum(axis=1)
    smooth = jnp.float32(1.0)
    dice = 2.0 * (inter_s + smooth) / (denom_s + smooth)
    return (jnp.float32(1.0) - jnp.sum(dice) / jnp.float32(N)).astype(jnp.float32)


if __name__ == "__main__":
    key = jax.random.PRNGKey(0)
    k1, k2 = jax.random.split(key)

    N, C, H, W = 2, 4, 16, 16
    # Predictions in [0, 1], binary-ish targets (typical dice-loss inputs).
    inp = jax.nn.sigmoid(jax.random.normal(k1, (N, C, H, W), jnp.float32))
    target = (jax.random.uniform(k2, (N, C, H, W), jnp.float32) > 0.5
              ).astype(jnp.float32)

    loss_fn = jax.jit(dice_loss)
    loss = jax.block_until_ready(loss_fn(inp, target))

    # Pure-JAX reference for sanity.
    xf = inp.reshape(N, -1)
    tf = target.reshape(N, -1)
    inter = jnp.sum(xf * tf, axis=1)
    ref = 1.0 - jnp.sum(2.0 * (inter + 1.0)
                        / (jnp.sum(xf, 1) + jnp.sum(tf, 1) + 1.0)) / N

    assert jnp.allclose(loss, ref, rtol=1e-5, atol=1e-6), (loss, ref)
    print("KERNEL_OK")
</pallas_src>

<mosaic_0001>
module attributes {stable_mosaic.version = 11 : i64} {
  func.func @_dice_kernel(%arg0: i32, %arg1: i32, %arg2: memref<8x128xf32, #tpu.memory_space<vmem>>, %arg3: memref<8x128xf32, #tpu.memory_space<vmem>>, %arg4: memref<8x1xf32, #tpu.memory_space<vmem>>, %arg5: memref<8x1xf32, #tpu.memory_space<vmem>>) attributes {dimension_semantics = [#tpu.dimension_semantics<parallel>, #tpu.dimension_semantics<arbitrary>], iteration_bounds = array<i64: 2, 1>, scalar_prefetch = 0 : i64, scratch_operands = 0 : i64, tpu.core_type = #tpu.core_type<tc>, window_params = [{transform_indices = @transform_0, window_bounds = array<i64: 8, 128>}, {transform_indices = @transform_1, window_bounds = array<i64: 8, 128>}, {transform_indices = @transform_2, window_bounds = array<i64: 8, 1>}, {transform_indices = @transform_3, window_bounds = array<i64: 8, 1>}]} {
    %c0_i32 = arith.constant 0 : i32
    %0 = arith.cmpi eq, %arg1, %c0_i32 : i32
    %1 = arith.extui %0 : i1 to i32
    %c0_i32_0 = arith.constant 0 : i32
    %2 = arith.cmpi ne, %1, %c0_i32_0 : i32
    scf.if %2 {
      %cst_13 = arith.constant 0.000000e+00 : f32
      %17 = vector.broadcast %cst_13 : f32 to vector<8x1xf32>
      %c0_14 = arith.constant 0 : index
      %c0_15 = arith.constant 0 : index
      %18 = vector.load %arg4[%c0_14, %c0_15] : memref<8x1xf32, #tpu.memory_space<vmem>>, vector<8x1xf32>
      tpu.vector_store %arg4[%c0_14, %c0_15], %17 {strides = array<i32>} : memref<8x1xf32, #tpu.memory_space<vmem>>, vector<8x1xf32>,
      %cst_16 = arith.constant 0.000000e+00 : f32
      %19 = vector.broadcast %cst_16 : f32 to vector<8x1xf32>
      %c0_17 = arith.constant 0 : index
      %c0_18 = arith.constant 0 : index
      %20 = vector.load %arg5[%c0_17, %c0_18] : memref<8x1xf32, #tpu.memory_space<vmem>>, vector<8x1xf32>
      tpu.vector_store %arg5[%c0_17, %c0_18], %19 {strides = array<i32>} : memref<8x1xf32, #tpu.memory_space<vmem>>, vector<8x1xf32>,
    } else {
    }
    %c0 = arith.constant 0 : index
    %c0_1 = arith.constant 0 : index
    %3 = vector.load %arg2[%c0, %c0_1] : memref<8x128xf32, #tpu.memory_space<vmem>>, vector<8x128xf32>
    %c0_2 = arith.constant 0 : index
    %c0_3 = arith.constant 0 : index
    %4 = vector.load %arg3[%c0_2, %c0_3] : memref<8x128xf32, #tpu.memory_space<vmem>>, vector<8x128xf32>
    %c0_4 = arith.constant 0 : index
    %c0_5 = arith.constant 0 : index
    %5 = vector.load %arg4[%c0_4, %c0_5] : memref<8x1xf32, #tpu.memory_space<vmem>>, vector<8x1xf32>
    %6 = arith.mulf %3, %4 : vector<8x128xf32>
    %cst = arith.constant dense<0.000000e+00> : vector<8xf32>
    %7 = vector.multi_reduction <add>, %6, %cst [1] : vector<8x128xf32> to vector<8xf32>
    %8 = vector.shape_cast %7 : vector<8xf32> to vector<8x1xf32>
    %9 = arith.addf %5, %8 : vector<8x1xf32>
    %c0_6 = arith.constant 0 : index
    %c0_7 = arith.constant 0 : index
    %10 = vector.load %arg4[%c0_6, %c0_7] : memref<8x1xf32, #tpu.memory_space<vmem>>, vector<8x1xf32>
    tpu.vector_store %arg4[%c0_6, %c0_7], %9 {strides = array<i32>} : memref<8x1xf32, #tpu.memory_space<vmem>>, vector<8x1xf32>,
    %c0_8 = arith.constant 0 : index
    %c0_9 = arith.constant 0 : index
    %11 = vector.load %arg5[%c0_8, %c0_9] : memref<8x1xf32, #tpu.memory_space<vmem>>, vector<8x1xf32>
    %12 = arith.addf %3, %4 : vector<8x128xf32>
    %cst_10 = arith.constant dense<0.000000e+00> : vector<8xf32>
    %13 = vector.multi_reduction <add>, %12, %cst_10 [1] : vector<8x128xf32> to vector<8xf32>
    %14 = vector.shape_cast %13 : vector<8xf32> to vector<8x1xf32>
    %15 = arith.addf %11, %14 : vector<8x1xf32>
    %c0_11 = arith.constant 0 : index
    %c0_12 = arith.constant 0 : index
    %16 = vector.load %arg5[%c0_11, %c0_12] : memref<8x1xf32, #tpu.memory_space<vmem>>, vector<8x1xf32>
    tpu.vector_store %arg5[%c0_11, %c0_12], %15 {strides = array<i32>} : memref<8x1xf32, #tpu.memory_space<vmem>>, vector<8x1xf32>,
    return
  }
  func.func @transform_0(%arg0: i32, %arg1: i32) -> (i32, i32) {
    %c0_i32 = arith.constant 0 : i32
    return %arg0, %arg1 : i32, i32
  }
  func.func @transform_1(%arg0: i32, %arg1: i32) -> (i32, i32) {
    %c0_i32 = arith.constant 0 : i32
    return %arg0, %arg1 : i32, i32
  }
  func.func @transform_2(%arg0: i32, %arg1: i32) -> (i32, i32) {
    %c0_i32 = arith.constant 0 : i32
    %c0_i32_0 = arith.constant 0 : i32
    return %arg0, %c0_i32 : i32, i32
  }
  func.func @transform_3(%arg0: i32, %arg1: i32) -> (i32, i32) {
    %c0_i32 = arith.constant 0 : i32
    %c0_i32_0 = arith.constant 0 : i32
    return %arg0, %c0_i32 : i32, i32
  }
}

</mosaic_0001>

<bundles_post_ra>
// kernel: dice_loss.1
= control target key start
LH: loop header
LB: loop body
LE: loop exit
PB: predicated region body
PF: predicated region fallthrough
CT: control target
= control target key end

     0   :  { %s441_s12 = smov 0   ;;  %s443_s13 = smov 0   ;;  %s484_s0 = inlined_call_operand.vmem [shape: f32[16,128], index: 0, kind: input, shape index: {}]   ;;  %s485_s1 = inlined_call_operand.vmem [shape: f32[16,128], index: 1, kind: input, shape index: {}]   ;;  %s486_s2 = inlined_call_operand.vmem [shape: f32[16,1], index: 2, kind: output, shape index: {0}]   ;;  %s487_s3 = inlined_call_operand.vmem [shape: f32[16,1], index: 3, kind: output, shape index: {1}]  }
   0x1   :  { %s445_s14 = smov 0  }
   0x2 LB: > { %s26_s15 = sadd.s32 1, %s414_s13  ;;  %p364_p0 = scmp.ge.s32.totalorder %s418_s14, 1  ;;  %s418_s14 = sphi %s445_s14, %s14_s14   ;;  %s414_s13 = sphi %s443_s13, %s489_s13   ;;  %s410_s12 = sphi %s441_s12, %s488_s12  }
   0x3   : > { %p28_p1 = scmp.ge.s32.totalorder %s26_s15, 2  ;;  %p170_p2 = scmp.lt.s32.totalorder %s418_s14, 3 }
   0x5   : > { %s491_s15 = smov (%p28_p1, %s26_s15), 0  ;;  %p171_p3 = pnand %p364_p0, %p170_p2 }
   0x6   : > { %p206_p4 = scmp.lt.s32.totalorder (!%p171_p3), %s410_s12, 1  ;;  %vm232_vm0 = vcmask (!%p171_p3), 7168   ;;  %v420_v3 = vmov (!%p171_p3), 0.0  }
   0x7   : > { %174 = sbr.rel (%p171_p3) target bundleno = 170 (0xaa), region = 28 }
   0xe   : > { %s493_s12 = smov (!%p206_p4, %s410_s12), 1 }
   0xf   : > { %s365_s16 = sshll.u32 %s493_s12, 3 }
  0x10   : > { %s212_s19 = scalar_lea.vmem %s484_s0, %s365_s16  ;;  %s219_s22 = scalar_lea.vmem %s485_s1, %s365_s16 }
  0x11   : > { %v235_v0 = vld [vmem:[%s212_s19] sm:$0xff]  ;;  %s223_s25 = scalar_lea.vmem %s486_s2, %s365_s16  ;;  %s227_s28 = scalar_lea.vmem %s487_s3, %s365_s16 }
  0x12   : > { %v236_v1 = vld [vmem:[%s219_s22] sm:$0xff]  ;;  %233 = vst.msk [vmem:[%s223_s25] sm:$0xff] %vm232_vm0, %v420_v3  ;;  %234 = vst.msk [vmem:[%s227_s28] sm:$0xff] %vm232_vm0, %v420_v3 }
  0x13   : > { %v238_v2 = vmul.f32 %v236_v1, %v235_v0  ;;  %v245_v4 = vadd.f32 %v236_v1, %v235_v0 }
  0x15   : > { %239 = vadd.xlane.f32.xlu0 %v238_v2 }
  0x19   : > { %246 = vadd.xlane.f32.xlu0 %v245_v4  ;;  %v237_v5 = vld [vmem:[%s223_s25] sm:$0xff] }
  0x1a   : > { %v244_v8 = vld [vmem:[%s227_s28] sm:$0xff] }
  0xa2   : > { %v240_v6 = vpop.xlane.xlu0 %239 }
  0xa3   : > { %v241_v7 = vadd.f32 %v240_v6, %v237_v5 }
  0xa5   : > { %243 = vst.msk [vmem:[%s223_s25] sm:$0xff] %vm232_vm0, %v241_v7 }
  0xa6   : > { %v247_v9 = vpop.xlane.xlu0 %246 }
  0xa7   : > { %v248_v10 = vadd.f32 %v247_v9, %v244_v8 }
  0xa9   : > { %249 = vst.msk [vmem:[%s227_s28] sm:$0xff] %vm232_vm0, %v248_v10 }
  0xaa PF: > { %s14_s14 = sadd.s32 1, %s418_s14   ;;  %s488_s12 = smov %s414_s13 }
  0xab   : > { %p11_p5 = scmp.ge.s32.totalorder %s14_s14, 4   ;;  %s489_s13 = smov %s491_s15 }
  0xad   :  { %13 = sbr.rel (!%p11_p5) target bundleno = 2 (0x2), region = 77 }

</bundles_post_ra>
